<compile_context>
chip_gen: v6e
topology: v6e:2x2x1
jax: 0.10.0
libtpu: 0.0.40
codegen_flags: <defaults>
</compile_context>

<pallas_src>
import functools

import jax
import jax.numpy as jnp
from jax.experimental import pallas as pl
from jax.experimental.pallas import tpu as pltpu


# ----------------------------------------------------------------------------
# Kernel: one grid step = (subject block sb, time tile tb).
# ----------------------------------------------------------------------------
def _nlpl_kernel(x_ref, h_ref, diag_ref, j_ref, acc_ref, *, beta: float):
    tb = pl.program_id(1)

    # Per-subject-block accumulator, resident across the (inner, sequential)
    # time axis; the subject axis is "parallel" and safe to shard across cores.
    @pl.when(tb == 0)
    def _init():
        acc_ref[...] = jnp.zeros_like(acc_ref)

    x = x_ref[...]                           # (Bs, tT, Np)  MXU dtype (bf16/f32)
    xf = x.astype(jnp.float32)
    h = h_ref[...]                           # (Bs, 1, Np)   f32
    d = diag_ref[...]                        # (Bs, 1, Np)   f32(mxu_dtype(J_ii))

    # MXU: batched state @ J (full J; diagonal contribution removed below).
    m = jnp.einsum("btn,bnm->btm", x, j_ref[...],
                   preferred_element_type=jnp.float32)         # (Bs, tT, Np) f32
    m = m - xf * d                                             # drop x_i * J_ii

    delta_h = (2.0 * beta) * xf * (h + m)

    # Numerically stable log-sigmoid, f32 on VPU/EUP.
    log_sig = jnp.minimum(delta_h, 0.0) - jnp.log1p(jnp.exp(-jnp.abs(delta_h)))

    # Vector accumulate (sum over the subject axis of this block).
    acc_ref[...] += jnp.sum(log_sig, axis=0, keepdims=True)


# ----------------------------------------------------------------------------
# Tiling / VMEM budgeting helpers.
# ----------------------------------------------------------------------------
def _vmem_capacity_bytes():
    try:
        cap = getattr(pltpu.get_tpu_info(), "vmem_capacity_bytes", None)
        if cap:
            return int(cap)
    except Exception:
        pass
    return 64 << 20  # conservative (v7x-sized) fallback


def _block_vmem_bytes(bs, tt, n, in_itemsize):
    """Per-step VMEM as physically allocated (default double-buffered pipeline)."""
    x_in = 2 * bs * tt * n * in_itemsize          # states (change every step)
    hv_in = 2 * 2 * bs * n * 4                    # h + diag(J), f32
    j_in = 2 * bs * n * n * in_itemsize           # J: re-DMA'd only on sb change,
                                                  # but still allocated x2 by the
                                                  # default pipeline
    temps = 4 * bs * tt * n * 4                   # f32 intermediates
    out = 2 * tt * n * 4                          # per-sb resident accumulator
    return x_in + hv_in + j_in + temps + out


def _choose_tiling(S, T, N, in_itemsize, budget_bytes):
    def fits(bs, tt):
        return _block_vmem_bytes(bs, tt, N, in_itemsize) <= budget_bytes

    # Time tile: legal tiles are multiples of 8 (sublane) or the full axis.
    if T % 8 != 0:
        # TODO(synk): if T % 8 != 0 and the full-T block overflows VMEM, pad the
        # time axis (with the analytic -log2 correction) instead of relying on
        # vmem_limit headroom.
        tT = T
    elif fits(1, T):
        tT = T
    else:
        tT = 8
        for cand in range(T - 8, 7, -8):
            if T % cand == 0 and fits(1, cand):
                tT = cand
                break

    # Subject block: grow toward a byte target for the states block (amortizes
    # the ~0.35 us per-grid-step overhead); stop at the VMEM budget.
    target_x_bytes = 4 << 20
    Bs = 1
    for cand in range(1, S + 1):
        if S % cand != 0:
            continue
        if not fits(cand, tT):
            break
        Bs = cand
        if cand * tT * N * in_itemsize >= target_x_bytes:
            break

    # Keep at least two subject blocks so the "parallel" subject axis can be
    # sharded across TensorCores (v7x megacore) whenever S allows it.
    if S // Bs < 2:
        for cand in range(Bs - 1, 0, -1):
            if S % cand == 0 and S // cand >= 2:
                Bs = cand
                break
    return Bs, tT


# ----------------------------------------------------------------------------
# Wrapper.
# ----------------------------------------------------------------------------
def ising_nlpl(data_ts, h, J, beta, *, mxu_dtype=jnp.bfloat16):
    """Negative log pseudo-likelihood.

    data_ts: (S, T, N) values in {-1, 0, +1}; h: (S, 1, N); J: (S, N, N).
    `mxu_dtype` controls the matmul operand dtype (bf16 default: x is exact in
    bf16, J is rounded). Elementwise math is always f32.
    """
    S, T, N = data_ts.shape
    assert h.shape == (S, 1, N) and J.shape == (S, N, N)

    # Pad nodes to a lane-dense multiple of 128. Padded (zero-state) elements
    # each contribute exactly logsigmoid(0) = -log(2); corrected analytically
    # below so the mean is unbiased.
    Np = max(128, ((N + 127) // 128) * 128)
    pad = Np - N
    if pad:
        data_ts = jnp.pad(data_ts, ((0, 0), (0, 0), (0, pad)))
        h = jnp.pad(h, ((0, 0), (0, 0), (0, pad)))
        J = jnp.pad(J, ((0, 0), (0, pad), (0, pad)))

    in_itemsize = jnp.dtype(mxu_dtype).itemsize
    vmem_cap = _vmem_capacity_bytes()
    budget = int(0.45 * vmem_cap)
    Bs, tT = _choose_tiling(S, T, Np, in_itemsize, budget)
    grid = (S // Bs, T // tT)

    x = data_ts.astype(mxu_dtype)
    Jc = J.astype(mxu_dtype)
    hf = h.astype(jnp.float32)
    # Cast the diagonal through the MXU dtype so the in-kernel subtraction
    # exactly cancels what the matmul added (x_i * mxu_dtype(J_ii)).
    diag_f = jnp.einsum("sii->si", J).astype(mxu_dtype).astype(jnp.float32)[:, None, :]

    blk = _block_vmem_bytes(Bs, tT, Np, in_itemsize)
    vmem_limit = int(max(32 << 20, min(int(0.8 * vmem_cap), int(1.5 * blk))))

    cost = pl.CostEstimate(
        flops=2 * S * T * Np * Np,
        transcendentals=2 * S * T * Np,
        bytes_accessed=(S * T * Np * in_itemsize + S * Np * Np * in_itemsize
                        + 2 * S * Np * 4 + (S // Bs) * tT * Np * 4),
    )

    acc = pl.pallas_call(
        functools.partial(_nlpl_kernel, beta=float(beta)),
        out_shape=jax.ShapeDtypeStruct((S // Bs, tT, Np), jnp.float32),
        grid_spec=pltpu.PrefetchScalarGridSpec(
            num_scalar_prefetch=0,
            grid=grid,
            in_specs=[
                pl.BlockSpec((Bs, tT, Np), lambda sb, tb: (sb, tb, 0)),   # states
                pl.BlockSpec((Bs, 1, Np), lambda sb, tb: (sb, 0, 0)),     # h
                pl.BlockSpec((Bs, 1, Np), lambda sb, tb: (sb, 0, 0)),     # diag(J)
                pl.BlockSpec((Bs, Np, Np), lambda sb, tb: (sb, 0, 0)),    # J (resident over time tiles)
            ],
            out_specs=pl.BlockSpec((1, tT, Np), lambda sb, tb: (sb, 0, 0)),
        ),
        compiler_params=pltpu.CompilerParams(
            dimension_semantics=("parallel", "arbitrary"),
            vmem_limit_bytes=vmem_limit,
        ),
        cost_estimate=cost,
    )(x, hf, diag_f, Jc)

    total = jnp.sum(acc)
    if pad:
        # Remove the padded lanes' logsigmoid(0) = -log(2) contributions.
        total = total + jnp.float32(S * T * pad) * jnp.log(jnp.float32(2.0))

    # TODO(synk): compute-bound large-T / N<=128 regimes could additionally
    # block-diagonal-pack subject pairs to fill the 256x256 MXU on v6e/v7x;
    # int8/fp8 J paths are left unimplemented (accuracy trade-off).
    return -total / jnp.float32(S * T * N)


# ----------------------------------------------------------------------------
# Plain-JAX glue: preprocessing (binarize_ts_data) and f32 reference.
# ----------------------------------------------------------------------------
def binarize_ts_data(data_ts, data_threshold):
    mean = jnp.mean(data_ts, axis=-2, keepdims=True)
    std = jnp.std(data_ts, axis=-2, keepdims=True, ddof=1)
    data_ts = (data_ts - mean) / std
    data_ts = data_ts.reshape(data_ts.shape[0], -1, data_ts.shape[-1])
    return jnp.sign(data_ts - data_threshold)


def ising_nlpl_reference(data_ts, h, J, beta):
    diag = jnp.einsum("sii->si", J)
    J_no_diag = J - jax.vmap(jnp.diag)(diag)
    m = jnp.matmul(data_ts, J_no_diag, precision=jax.lax.Precision.HIGHEST)
    delta_h = beta * 2.0 * data_ts * (h + m)
    return -jnp.mean(jax.nn.log_sigmoid(delta_h))


if __name__ == "__main__":
    beta = 0.5
    threshold = 0.1
    key = jax.random.PRNGKey(0)
    k1, k2, k3, k4, k5, k6 = jax.random.split(key, 6)

    # Case 1: lane-aligned nodes (N a multiple of 128).
    S, T, N = 4, 64, 128
    raw_ts = jax.random.normal(k1, (S, T, N), dtype=jnp.float32)
    data_ts = binarize_ts_data(raw_ts, threshold)             # (S, T, N), +/-1
    h = jax.random.normal(k2, (S, 1, N), dtype=jnp.float32)
    J = jax.random.normal(k3, (S, N, N), dtype=jnp.float32)

    ref = ising_nlpl_reference(data_ts, h, J, beta)

    nlpl_f32 = jax.block_until_ready(
        ising_nlpl(data_ts, h, J, beta, mxu_dtype=jnp.float32))
    assert jnp.allclose(nlpl_f32, ref, rtol=1e-3, atol=1e-3), (nlpl_f32, ref)

    nlpl_bf16 = jax.block_until_ready(ising_nlpl(data_ts, h, J, beta))
    assert jnp.allclose(nlpl_bf16, ref, rtol=1e-2, atol=1e-2), (nlpl_bf16, ref)

    # Case 2: N not a multiple of 128 (exercises node padding + -log2 fix).
    S2, T2, N2 = 3, 40, 96
    raw2 = jax.random.normal(k4, (S2, T2, N2), dtype=jnp.float32)
    dts2 = binarize_ts_data(raw2, threshold)
    h2 = jax.random.normal(k5, (S2, 1, N2), dtype=jnp.float32)
    J2 = jax.random.normal(k6, (S2, N2, N2), dtype=jnp.float32)
    ref2 = ising_nlpl_reference(dts2, h2, J2, beta)
    out2 = jax.block_until_ready(
        ising_nlpl(dts2, h2, J2, beta, mxu_dtype=jnp.float32))
    assert jnp.allclose(out2, ref2, rtol=1e-3, atol=1e-3), (out2, ref2)

    print("KERNEL_OK")
</pallas_src>

<mosaic_0001>
module attributes {stable_mosaic.version = 11 : i64} {
  func.func @_nlpl_kernel(%arg0: i32, %arg1: i32, %arg2: memref<2x64x128xf32, #tpu.memory_space<vmem>>, %arg3: memref<2x1x128xf32, #tpu.memory_space<vmem>>, %arg4: memref<2x1x128xf32, #tpu.memory_space<vmem>>, %arg5: memref<2x128x128xf32, #tpu.memory_space<vmem>>, %arg6: memref<1x64x128xf32, #tpu.memory_space<vmem>>) attributes {dimension_semantics = [#tpu.dimension_semantics<parallel>, #tpu.dimension_semantics<arbitrary>], iteration_bounds = array<i64: 2, 1>, scalar_prefetch = 0 : i64, scratch_operands = 0 : i64, tpu.core_type = #tpu.core_type<tc>, window_params = [{transform_indices = @transform_0, window_bounds = array<i64: 2, 64, 128>}, {transform_indices = @transform_1, window_bounds = array<i64: 2, 1, 128>}, {transform_indices = @transform_2, window_bounds = array<i64: 2, 1, 128>}, {transform_indices = @transform_3, window_bounds = array<i64: 2, 128, 128>}, {transform_indices = @transform_4, window_bounds = array<i64: 1, 64, 128>}]} {
    %c0_i32 = arith.constant 0 : i32
    %0 = arith.cmpi eq, %arg1, %c0_i32 : i32
    %1 = arith.extui %0 : i1 to i32
    %c0_i32_0 = arith.constant 0 : i32
    %2 = arith.cmpi ne, %1, %c0_i32_0 : i32
    scf.if %2 {
      %cst_22 = arith.constant 0.000000e+00 : f32
      %29 = vector.broadcast %cst_22 : f32 to vector<1x64x128xf32>
      %c0_23 = arith.constant 0 : index
      %c0_24 = arith.constant 0 : index
      %c0_25 = arith.constant 0 : index
      %30 = vector.load %arg6[%c0_23, %c0_24, %c0_25] : memref<1x64x128xf32, #tpu.memory_space<vmem>>, vector<1x64x128xf32>
      tpu.vector_store %arg6[%c0_23, %c0_24, %c0_25], %29 {strides = array<i32>} : memref<1x64x128xf32, #tpu.memory_space<vmem>>, vector<1x64x128xf32>,
    } else {
    }
    %c0 = arith.constant 0 : index
    %c0_1 = arith.constant 0 : index
    %c0_2 = arith.constant 0 : index
    %3 = vector.load %arg2[%c0, %c0_1, %c0_2] : memref<2x64x128xf32, #tpu.memory_space<vmem>>, vector<2x64x128xf32>
    %c0_3 = arith.constant 0 : index
    %c0_4 = arith.constant 0 : index
    %c0_5 = arith.constant 0 : index
    %4 = vector.load %arg3[%c0_3, %c0_4, %c0_5] : memref<2x1x128xf32, #tpu.memory_space<vmem>>, vector<2x1x128xf32>
    %c0_6 = arith.constant 0 : index
    %c0_7 = arith.constant 0 : index
    %c0_8 = arith.constant 0 : index
    %5 = vector.load %arg4[%c0_6, %c0_7, %c0_8] : memref<2x1x128xf32, #tpu.memory_space<vmem>>, vector<2x1x128xf32>
    %c0_9 = arith.constant 0 : index
    %c0_10 = arith.constant 0 : index
    %c0_11 = arith.constant 0 : index
    %6 = vector.load %arg5[%c0_9, %c0_10, %c0_11] : memref<2x128x128xf32, #tpu.memory_space<vmem>>, vector<2x128x128xf32>
    "tpu.trace_start"() <{level = 10 : i32, message = "btn,bnm->btm"}> : () -> ()
    %cst = arith.constant dense<0.000000e+00> : vector<2x64x128xf32>
    %7 = tpu.matmul %3, %6, %cst {dimension_numbers = #tpu.dot_dimension_numbers<[2], [1], [1], [2], [0, 0, 0, 1, 1, 2], [0], [0]>} : vector<2x64x128xf32>, vector<2x128x128xf32>, vector<2x64x128xf32> -> vector<2x64x128xf32>
    "tpu.trace_stop"() : () -> ()
    %8 = vector.broadcast %5 : vector<2x1x128xf32> to vector<2x64x128xf32>
    %9 = arith.mulf %3, %8 : vector<2x64x128xf32>
    %10 = arith.subf %7, %9 : vector<2x64x128xf32>
    %cst_12 = arith.constant 1.000000e+00 : f32
    %11 = vector.broadcast %cst_12 : f32 to vector<2x64x128xf32>
    %12 = arith.mulf %11, %3 : vector<2x64x128xf32>
    %13 = vector.broadcast %4 : vector<2x1x128xf32> to vector<2x64x128xf32>
    %14 = arith.addf %13, %10 : vector<2x64x128xf32>
    %15 = arith.mulf %12, %14 : vector<2x64x128xf32>
    %cst_13 = arith.constant 0.000000e+00 : f32
    %16 = vector.broadcast %cst_13 : f32 to vector<2x64x128xf32>
    %17 = arith.minimumf %15, %16 : vector<2x64x128xf32>
    %18 = math.absf %15 : vector<2x64x128xf32>
    %cst_14 = arith.constant 0.000000e+00 : f32
    %19 = vector.broadcast %cst_14 : f32 to vector<2x64x128xf32>
    %20 = arith.subf %19, %18 : vector<2x64x128xf32>
    %21 = math.exp %20 : vector<2x64x128xf32>
    %22 = math.log1p %21 : vector<2x64x128xf32>
    %23 = arith.subf %17, %22 : vector<2x64x128xf32>
    %c0_15 = arith.constant 0 : index
    %c0_16 = arith.constant 0 : index
    %c0_17 = arith.constant 0 : index
    %24 = vector.load %arg6[%c0_15, %c0_16, %c0_17] : memref<1x64x128xf32, #tpu.memory_space<vmem>>, vector<1x64x128xf32>
    %cst_18 = arith.constant dense<0.000000e+00> : vector<64x128xf32>
    %25 = vector.multi_reduction <add>, %23, %cst_18 [0] : vector<2x64x128xf32> to vector<64x128xf32>
    %26 = vector.shape_cast %25 : vector<64x128xf32> to vector<1x64x128xf32>
    %27 = arith.addf %24, %26 : vector<1x64x128xf32>
    %c0_19 = arith.constant 0 : index
    %c0_20 = arith.constant 0 : index
    %c0_21 = arith.constant 0 : index
    %28 = vector.load %arg6[%c0_19, %c0_20, %c0_21] : memref<1x64x128xf32, #tpu.memory_space<vmem>>, vector<1x64x128xf32>
    tpu.vector_store %arg6[%c0_19, %c0_20, %c0_21], %27 {strides = array<i32>} : memref<1x64x128xf32, #tpu.memory_space<vmem>>, vector<1x64x128xf32>,
    return
  }
  func.func @transform_0(%arg0: i32, %arg1: i32) -> (i32, i32, i32) {
    %c0_i32 = arith.constant 0 : i32
    %c0_i32_0 = arith.constant 0 : i32
    return %arg0, %arg1, %c0_i32 : i32, i32, i32
  }
  func.func @transform_1(%arg0: i32, %arg1: i32) -> (i32, i32, i32) {
    %c0_i32 = arith.constant 0 : i32
    %c0_i32_0 = arith.constant 0 : i32
    %c0_i32_1 = arith.constant 0 : i32
    return %arg0, %c0_i32, %c0_i32_0 : i32, i32, i32
  }
  func.func @transform_2(%arg0: i32, %arg1: i32) -> (i32, i32, i32) {
    %c0_i32 = arith.constant 0 : i32
    %c0_i32_0 = arith.constant 0 : i32
    %c0_i32_1 = arith.constant 0 : i32
    return %arg0, %c0_i32, %c0_i32_0 : i32, i32, i32
  }
  func.func @transform_3(%arg0: i32, %arg1: i32) -> (i32, i32, i32) {
    %c0_i32 = arith.constant 0 : i32
    %c0_i32_0 = arith.constant 0 : i32
    %c0_i32_1 = arith.constant 0 : i32
    return %arg0, %c0_i32, %c0_i32_0 : i32, i32, i32
  }
  func.func @transform_4(%arg0: i32, %arg1: i32) -> (i32, i32, i32) {
    %c0_i32 = arith.constant 0 : i32
    %c0_i32_0 = arith.constant 0 : i32
    %c0_i32_1 = arith.constant 0 : i32
    return %arg0, %c0_i32, %c0_i32_0 : i32, i32, i32
  }
}

</mosaic_0001>

<bundles_post_ra>
// kernel: tpu_custom_call.1
= control target key start
LH: loop header
LB: loop body
LE: loop exit
PB: predicated region body
PF: predicated region fallthrough
CT: control target
= control target key end

     0   :  { %s2309_s0 = inlined_call_operand.hbm [shape: f32[4,64,128], index: 0, kind: input, shape index: {}]   ;;  %s2310_s1 = inlined_call_operand.hbm [shape: f32[4,1,128], index: 1, kind: input, shape index: {}]   ;;  %s2311_s2 = inlined_call_operand.hbm [shape: f32[4,1,128], index: 2, kind: input, shape index: {}]   ;;  %s2312_s3 = inlined_call_operand.hbm [shape: f32[4,128,128], index: 3, kind: input, shape index: {}]   ;;  %s2313_s4 = inlined_call_operand.hbm [shape: f32[2,64,128], index: 4, kind: output, shape index: {}]  }
   0x1   :  { %2319 = sst [smem:[#allocation17_spill]] %s2309_s0 }
   0x2   :  { %2320 = sst [smem:[#allocation18_spill]] %s2310_s1 }
   0x3   :  { %2321 = sst [smem:[#allocation19_spill]] %s2311_s2 }
   0x4   :  { %9 = vsyncpa [#allocation3], 0 }
   0x5   :  { %11 = vsyncpa [#allocation3 + $0x1], 0 }
   0x6   :  { %12 = vsyncpa [#allocation6], 0 }
   0x7   :  { %14 = vsyncpa [#allocation6 + $0x1], 0 }
   0x8   :  { %15 = vsyncpa [#allocation9], 0 }
   0x9   :  { %17 = vsyncpa [#allocation9 + $0x1], 0 }
   0xa   :  { %18 = vsyncpa [#allocation4], 0 }
   0xb   :  { %20 = vsyncpa [#allocation4 + $0x1], 0  ;;  %s1716_s15 = smov 0   ;;  %s1718_s16 = smov 0  }
   0xc   :  { %s1720_s17 = smov 0   ;;  %s1722_s18 = smov 0  }
   0xd   :  { %s1724_s19 = smov 0   ;;  %s1726_s20 = smov 0  }
   0xe LB: > { %s1747_s21 = sadd.s32 4294967295, %s1678_s20   ;;  %s1155_s22 = sadd.s32 4294967294, %s1678_s20   ;;  %s1678_s20 = sphi %s1726_s20, %s26_s20   ;;  %s1674_s19 = sphi %s1724_s19, %s2360_s19   ;;  %s1670_s18 = sphi %s1722_s18, %s2359_s18   ;;  %s1666_s17 = sphi %s1720_s17, %s2358_s17   ;;  %s1662_s16 = sphi %s1718_s16, %s2357_s16   ;;  %s1658_s15 = sphi %s1716_s15, %s2356_s15  }
   0xf   : > { %s38_s23 = sadd.s32 1, %s1674_s19  ;;  %s47_s24 = sadd.s32 1, %s1666_s17 }
  0x10   : > { %p40_p0 = scmp.ge.s32.totalorder %s38_s23, 2  ;;  %p54_p1 = scmp.ne.s32.totalorder %s1666_s17, %s1662_s16 }
  0x11   : > { %p55_p2 = scmp.eq.s32.totalorder %s1678_s20, 0  ;;  %p60_p3 = scmp.ne.s32.totalorder %s1662_s16, %s1658_s15 }
  0x12   : > { %s2362_s23 = smov (%p40_p0, %s38_s23), 0  ;;  %p61_p5 = scmp.eq.s32.totalorder %s1747_s21, 0 }
  0x13   : > { %2322 = sst [smem:[#allocation15_spill]] %s2362_s23  ;;  %p1759_p4 = por %p55_p2, %p54_p1 }
  0x14   : > { %s42_s26 = ssub.s32 %s1674_s19, %s2362_s23  ;;  %p162_p6 = scmp.eq.s32.totalorder %s1747_s21, 1 }
  0x15   : > { %p45_p7 = scmp.eq.s32.totalorder %s42_s26, 0  ;;  %p1767_p8 = por %p61_p5, %p60_p3 }
  0x16   : > { %p1771_p9 = por %p162_p6, %p54_p1  ;;  %p168_p10 = scmp.eq.s32.totalorder %s1155_s22, 1 }
  0x17   : > { %s1776_s29 = scalar_select %p45_p7, %s1666_s17, %s47_s24  }
  0x18   : > { %p1778_p11 = por %p168_p10, %p60_p3  ;;  %p1157_p12 = scmp.ge.s32.totalorder %s1678_s20, 2 }
  0x19   : > { %2326 = sst [smem:[#allocation16_spill]] %s1776_s29  ;;  %p1357_p13 = scmp.lt.s32.totalorder %s1678_s20, 2 }
  0x1a   : > { %s1785_s5 = sand.u32 1, %s1666_s17   ;;  %s212_s6 = sand.u32 1, %s1678_s20  }
  0x1b   : > { %s1162_s7 = sshll.u32 %s1785_s5, 1  ;;  %p1791_p0 = pnand %p1357_p13, %p1759_p4 }
  0x1c   : > { %s1189_s9 = sshll.u32 %s1674_s19, 5  ;;  %s2329_s1 = sld [smem:[#allocation18_spill]] }
  0x1d   : > { %s216_s13 = scalar_lea.vmem [#allocation5], %s1162_s7  ;;  %s1801_s22 = scalar_lea.sflag [#allocation6], %s212_s6 }
  0x1e   : > { %s223_s14 = sshll.u32 %s216_s13, 4  ;;  %p1480_p1 = pneg %p1791_p0  ;;  %s224_s14 = int_to_ptr.vmem [resolvable:$true] %s223_s14 }
  0x1f   : > { %s1491_s24 = scalar_lea.vmem %s224_s14, 32  ;;  %s1680_s25 = smov [#allocation5]  }
  0x20   : > { %p1492_p2 = scmp.ne.s32.totalorder %s224_s14, %s1491_s24  ;;  %s1496_s26 = sshll.u32 %s1680_s25, 4  ;;  %s1497_s26 = int_to_ptr.vmem [resolvable:$false] %s1496_s26 }
  0x21   : > { %s1498_s23 = scalar_lea.vmem %s1497_s26, 64  ;;  %p1499_p5 = scmp.lt.s32.totalorder %s224_s14, %s1497_s26 }
  0x22   : > { %s222_s12 = scalar_lea.hbm %s2329_s1, %s1189_s9  ;;  %p1494_p3 = pnand %p1492_p2, %p1480_p1 }
  0x23   : > { %p1500_p6 = scmp.lt.s32.totalorder %s1498_s23, %s1491_s24 }
  0x24   : > { %p1495_p4 = pneg %p1494_p3 }
  0x25   : > { %p1501_p7 = por %p1500_p6, %p1499_p5 }
  0x27   : > { %p1502_p10 = pnand %p1501_p7, %p1495_p4 }
  0x29   : > { %1505 = shalt.err (!%p1502_p10)
}
  0x2a   : > { %s2315_s10 = smov 16   ;;  %s2316_s6 = smov 1  }
  0x2b   : > { %1346 = dma.hbm_to_vmem [thread:$0]  (!%p1791_p0), %s222_s12, 32, %s224_s14, %s1801_s22, %s2315_s10, %s2315_s10, %s2316_s6  }
  0x2c   : > { %s2330_s2 = sld [smem:[#allocation19_spill]]  ;;  %s237_s24 = scalar_lea.vmem [#allocation7], %s1162_s7 }
  0x2d   : > { %s244_s25 = sshll.u32 %s237_s24, 4  ;;  %p1172_p13 = scmp.ge.s32.totalorder %s1678_s20, 1  ;;  %s1822_s25 = int_to_ptr.vmem [resolvable:$true] %s244_s25 }
  0x2e   : > { %p274_p2 = scmp.lt.s32.totalorder %s1678_s20, 3  ;;  %s1158_s1 = sshll.u32 %s1785_s5, 7 }
  0x2f   : > { %s1188_s29 = sshll.u32 %s1674_s19, 11  ;;  %s2332_s0 = sld [smem:[#allocation17_spill]] }
  0x30   : > { %p1825_p3 = pnand %p1172_p13, %p274_p2  ;;  %s189_s10 = scalar_lea.sflag [#allocation3], %s1785_s5 }
  0x31   : > { %s1683_s24 = smov [#allocation2]  }
  0x32   : > { %s1817_s13 = scalar_lea.hbm %s2330_s2, %s1189_s9  ;;  %s192_s9 = scalar_lea.vmem [#allocation2], %s1158_s1 }
  0x33   : > { %s202_s23 = sshll.u32 %s192_s9, 4  ;;  %s1524_s6 = sshll.u32 %s1683_s24, 4  ;;  %s203_s23 = int_to_ptr.vmem [resolvable:$true] %s202_s23  ;;  %s1525_s6 = int_to_ptr.vmem [resolvable:$false] %s1524_s6 }
  0x34   : > { %s1519_s7 = scalar_lea.vmem %s203_s23, 2048  ;;  %s1526_s2 = scalar_lea.vmem %s1525_s6, 4096 }
  0x35   : > { %s201_s11 = scalar_lea.hbm %s2332_s0, %s1188_s29  ;;  %p1520_p4 = scmp.ne.s32.totalorder %s203_s23, %s1519_s7 }
  0x36   : > { %p1527_p7 = scmp.lt.s32.totalorder %s203_s23, %s1525_s6  ;;  %p1528_p10 = scmp.lt.s32.totalorder %s1526_s2, %s1519_s7 }
  0x37   : > { %p1522_p5 = pnand %p1520_p4, %p1480_p1 }
  0x38   : > { %p1529_p13 = por %p1528_p10, %p1527_p7 }
  0x39   : > { %p1523_p6 = pneg %p1522_p5 }
  0x3b   : > { %p1530_p2 = pnand %p1529_p13, %p1523_p6 }
  0x3d   : > { %1533 = shalt.err (!%p1530_p2)
}
  0x3e   : > { %s2317_s29 = smov 128   ;;  %s2318_s1 = smov 8  }
  0x3f   : > { %1343 = dma.hbm_to_vmem [thread:$0]  (!%p1791_p0), %s201_s11, 2048, %s203_s23, %s189_s10, %s2317_s29, %s2317_s29, %s2318_s1  }
  0x40   : > { %s1547_s12 = scalar_lea.vmem %s1822_s25, 32  ;;  %s1686_s2 = smov [#allocation7]  }
  0x41   : > { %p1548_p4 = scmp.ne.s32.totalorder %s1822_s25, %s1547_s12  ;;  %s1552_s6 = sshll.u32 %s1686_s2, 4  ;;  %s1553_s6 = int_to_ptr.vmem [resolvable:$false] %s1552_s6 }
  0x42   : > { %s1554_s14 = scalar_lea.vmem %s1553_s6, 64  ;;  %p1555_p6 = scmp.lt.s32.totalorder %s1822_s25, %s1553_s6 }
  0x43   : > { %p1550_p5 = pnand %p1548_p4, %p1480_p1  ;;  %p1556_p10 = scmp.lt.s32.totalorder %s1554_s14, %s1547_s12 }
  0x45   : > { %p1551_p7 = pneg %p1550_p5  ;;  %p1557_p13 = por %p1556_p10, %p1555_p6 }
  0x47   : > { %p1558_p2 = pnand %p1557_p13, %p1551_p7 }
  0x49   : > { %1561 = shalt.err (!%p1558_p2)
}
  0x4a   : > { %s2333_s9 = smov 1   ;;  %s2334_s7 = smov 16  }
  0x4b   : > { %1349 = dma.hbm_to_vmem [thread:$0]  (!%p1791_p0), %s1817_s13, 32, %s1822_s25, %s1801_s22, %s2334_s7, %s2334_s7, %s2333_s9  }
  0x4c   : > { %s1168_s10 = sshll.u32 %s1785_s5, 8  ;;  %s1192_s11 = sshll.u32 %s1674_s19, 12 }
  0x4d   : > { %s265_s12 = scalar_lea.hbm %s2312_s3, %s1192_s11  ;;  %s258_s2 = scalar_lea.vmem [#allocation8], %s1168_s10 }
  0x4e   : > { %s266_s6 = sshll.u32 %s258_s2, 4  ;;  %s255_s14 = scalar_lea.sflag [#allocation9], %s1785_s5  ;;  %s267_s6 = int_to_ptr.vmem [resolvable:$true] %s266_s6 }
  0x4f   : > { %s1575_s29 = scalar_lea.vmem %s267_s6, 4096  ;;  %s1687_s1 = smov [#allocation8]  }
  0x50   : > { %p1576_p4 = scmp.ne.s32.totalorder %s267_s6, %s1575_s29  ;;  %s1580_s0 = sshll.u32 %s1687_s1, 4  ;;  %s1581_s0 = int_to_ptr.vmem [resolvable:$false] %s1580_s0 }
  0x51   : > { %s1582_s22 = scalar_lea.vmem %s1581_s0, 8192  ;;  %p1583_p6 = scmp.lt.s32.totalorder %s267_s6, %s1581_s0 }
  0x52   : > { %p1578_p5 = pnand %p1576_p4, %p1480_p1  ;;  %p1584_p10 = scmp.lt.s32.totalorder %s1582_s22, %s1575_s29 }
  0x54   : > { %p1579_p7 = pneg %p1578_p5  ;;  %p1585_p13 = por %p1584_p10, %p1583_p6 }
  0x56   : > { %p1586_p2 = pnand %p1585_p13, %p1579_p7 }
  0x58   : > { %1589 = shalt.err (!%p1586_p2)
}
  0x59   : > { %s2335_s13 = smov 8   ;;  %s2336_s25 = smov 128  }
  0x5a   : > { %1352 = dma.hbm_to_vmem [thread:$0]  (!%p1791_p0), %s265_s12, 4096, %s267_s6, %s255_s14, %s2336_s25, %s2336_s25, %s2335_s13  }
  0x5b   : > { %278 = sbr.rel (%p1825_p3) target bundleno = 444 (0x1bc), region = 36  ;;  %s1874_s5 = sand.u32 (!%p1825_p3), 1, %s1662_s16  }
  0x5c   : > { %s1173_s0 = sshll.u32 (!%p1825_p3), %s1874_s5, 7  ;;  %s281_s29 = scalar_lea.sflag (!%p1825_p3), [#allocation3], %s1874_s5 }
  0x5d   : > { %s1878_s1 = scalar_lea.vmem (!%p1825_p3), [#allocation2], %s1173_s0 }
  0x60   : > { %1641 = dma.done.wait (%p1767_p8), %s281_s29, 2048  }
  0x61   : > { %1643 = vsyncadd (%p1767_p8), %s281_s29, 4294965248  ;;  %s289_s8 = sand.u32 1, %s1747_s21   ;;  %s1174_s26 = sshll.u32 %s1874_s5, 1 }
  0x62   : > { %s290_s9 = scalar_lea.sflag [#allocation6], %s289_s8  ;;  %s1886_s7 = scalar_lea.vmem [#allocation5], %s1174_s26 }
  0x63   : > { %1645 = dma.done.wait (%p1767_p8), %s290_s9, 64  }
  0x64   : > { %1647 = vsyncadd (%p1767_p8), %s290_s9, 4294967232  ;;  %s1176_s10 = sshll.u32 %s1874_s5, 8  ;;  %s1893_s11 = scalar_lea.vmem [#allocation7], %s1174_s26 }
  0x65   : > { %s308_s23 = scalar_lea.sflag [#allocation9], %s1874_s5  ;;  %s1896_s24 = scalar_lea.vmem [#allocation8], %s1176_s10 }
  0x66   : > { %1649 = dma.done.wait (%p1767_p8), %s308_s23, 4096  }
  0x67   : > { %1651 = vsyncadd (%p1767_p8), %s308_s23, 4294963200  ;;  %v403_v0 = vld [vmem:[%s1896_s24 + $0x78] sm:$0xff]  ;;  %v402_v2 = vld [vmem:[%s1896_s24 + $0x70] sm:$0xff]  ;;  %s1177_s21 = sshll.u32 %s1874_s5, 6  ;;  %s1193_s12 = sshll.u32 %s1670_s18, 10 }
  0x68   : > { %v419_v1 = vld [vmem:[%s1896_s24 + $0xf8] sm:$0xff]  ;;  %1242 = vmatprep.subr.mxu0 %v403_v0  ;;  %v418_v3 = vld [vmem:[%s1896_s24 + $0xf0] sm:$0xff]  ;;  %v401_v4 = vld [vmem:[%s1896_s24 + $0x68] sm:$0xff]  ;;  %s2205_s27 = scalar_lea.vmem [#allocation10], %s1177_s21  ;;  %s2258_s22 = scalar_lea.hbm %s2313_s4, %s1193_s12 }
  0x69   : > { %1286 = vmatprep.subr.mxu1 %v419_v1  ;;  %1243 = vmatpush3.msra.mxu0 %v403_v0  ;;  %v417_v5 = vld [vmem:[%s1896_s24 + $0xe8] sm:$0xff]  ;;  %v400_v6 = vld [vmem:[%s1896_s24 + $0x60] sm:$0xff]  ;;  %v399_v8 = vld [vmem:[%s1896_s24 + $0x58] sm:$0xff]  ;;  %s1004_s2 = sshll.u32 %s2205_s27, 4  ;;  %s991_s13 = scalar_lea.sflag [#allocation4], %s1874_s5  ;;  %s2260_s2 = int_to_ptr.vmem [resolvable:$true] %s1004_s2 }
  0x6a   : > { %1287 = vmatpush3.msra.mxu1 %v419_v1  ;;  %1244 = vmatprep.subr.mxu0 %v402_v2  ;;  %v416_v7 = vld [vmem:[%s1896_s24 + $0xe0] sm:$0xff]  ;;  %v415_v9 = vld [vmem:[%s1896_s24 + $0xd8] sm:$0xff]  ;;  %v398_v10 = vld [vmem:[%s1896_s24 + $0x50] sm:$0xff]  ;;  %s1590_s25 = scalar_lea.vmem %s2260_s2, 1024  ;;  %s1688_s18 = smov [#allocation10]  }
  0x6b   : > { %1288 = vmatprep.subr.mxu1 %v418_v3  ;;  %1245 = vmatpush3.msra.mxu0 %v402_v2  ;;  %v414_v11 = vld [vmem:[%s1896_s24 + $0xd0] sm:$0xff]  ;;  %v397_v12 = vld [vmem:[%s1896_s24 + $0x48] sm:$0xff]  ;;  %v396_v14 = vld [vmem:[%s1896_s24 + $0x40] sm:$0xff]  ;;  %p1591_p8 = scmp.ne.s32.totalorder %s2260_s2, %s1590_s25  ;;  %s1594_s0 = sshll.u32 %s1688_s18, 4  ;;  %s1595_s0 = int_to_ptr.vmem [resolvable:$false] %s1594_s0 }
  0x6c   : > { %1289 = vmatpush3.msra.mxu1 %v418_v3  ;;  %1246 = vmatprep.subr.mxu0 %v401_v4  ;;  %v413_v13 = vld [vmem:[%s1896_s24 + $0xc8] sm:$0xff]  ;;  %v412_v15 = vld [vmem:[%s1896_s24 + $0xc0] sm:$0xff]  ;;  %v395_v16 = vld [vmem:[%s1896_s24 + $0x38] sm:$0xff]  ;;  %s1596_s29 = scalar_lea.vmem %s1595_s0, 2048  ;;  %p1597_p3 = scmp.lt.s32.totalorder %s2260_s2, %s1595_s0 }
  0x6d   : > { %1290 = vmatprep.subr.mxu1 %v417_v5  ;;  %1247 = vmatpush3.msra.mxu0 %v401_v4  ;;  %v411_v17 = vld [vmem:[%s1896_s24 + $0xb8] sm:$0xff]  ;;  %v394_v18 = vld [vmem:[%s1896_s24 + $0x30] sm:$0xff]  ;;  %v393_v20 = vld [vmem:[%s1896_s24 + $0x28] sm:$0xff]  ;;  %p1592_p0 = pnand %p1591_p8, %p1771_p9  ;;  %p1598_p4 = scmp.lt.s32.totalorder %s1596_s29, %s1590_s25 }
  0x6e   : > { %1291 = vmatpush3.msra.mxu1 %v417_v5  ;;  %1248 = vmatprep.subr.mxu0 %v400_v6  ;;  %v410_v19 = vld [vmem:[%s1896_s24 + $0xb0] sm:$0xff]  ;;  %v409_v21 = vld [vmem:[%s1896_s24 + $0xa8] sm:$0xff]  ;;  %v392_v22 = vld [vmem:[%s1896_s24 + $0x20] sm:$0xff] }
  0x6f   : > { %1292 = vmatprep.subr.mxu1 %v416_v7  ;;  %1249 = vmatpush3.msra.mxu0 %v400_v6  ;;  %v408_v23 = vld [vmem:[%s1896_s24 + $0xa0] sm:$0xff]  ;;  %v391_v24 = vld [vmem:[%s1896_s24 + $0x18] sm:$0xff]  ;;  %v390_v26 = vld [vmem:[%s1896_s24 + $0x10] sm:$0xff]  ;;  %p1593_p1 = pneg %p1592_p0  ;;  %p1599_p5 = por %p1598_p4, %p1597_p3 }
  0x70   : > { %1293 = vmatpush3.msra.mxu1 %v416_v7  ;;  %1250 = vmatprep.subr.mxu0 %v399_v8  ;;  %v407_v25 = vld [vmem:[%s1896_s24 + $0x98] sm:$0xff]  ;;  %v406_v27 = vld [vmem:[%s1896_s24 + $0x90] sm:$0xff]  ;;  %v389_v28 = vld [vmem:[%s1896_s24 + $0x8] sm:$0xff] }
  0x71   : > { %1294 = vmatprep.subr.mxu1 %v415_v9  ;;  %1251 = vmatpush3.msra.mxu0 %v399_v8  ;;  %v405_v29 = vld [vmem:[%s1896_s24 + $0x88] sm:$0xff]  ;;  %v388_v30 = vld [vmem:[%s1896_s24] sm:$0xff]  ;;  %v1935_v32 = vld [vmem:[%s1878_s1] sm:$0xff]  ;;  %p1600_p7 = pnand %p1599_p5, %p1593_p1 }
  0x72   : > { %1295 = vmatpush3.msra.mxu1 %v415_v9  ;;  %1252 = vmatprep.subr.mxu0 %v398_v10  ;;  %v404_v31 = vld [vmem:[%s1896_s24 + $0x80] sm:$0xff]  ;;  %v1938_v33 = vld [vmem:[%s1878_s1 + $0x40] sm:$0xff]  ;;  %v1944_v36 = vld [vmem:[%s1878_s1 + $0x10] sm:$0xff] }
  0x73   : > { %1296 = vmatprep.subr.mxu1 %v414_v11  ;;  %1253 = vmatpush3.msra.mxu0 %v398_v10  ;;  %v369_v34 = vld [vmem:[%s1878_s1 + $0x8] sm:$0xff]  ;;  %v1947_v37 = vld [vmem:[%s1878_s1 + $0x50] sm:$0xff]  ;;  %v1953_v38 = vld [vmem:[%s1878_s1 + $0x18] sm:$0xff] }
  0x74   : > { %1297 = vmatpush3.msra.mxu1 %v414_v11  ;;  %1254 = vmatprep.subr.mxu0 %v397_v12  ;;  %v377_v35 = vld [vmem:[%s1878_s1 + $0x48] sm:$0xff]  ;;  %v1956_v39 = vld [vmem:[%s1878_s1 + $0x58] sm:$0xff]  ;;  %v1959_v40 = vld [vmem:[%s1878_s1 + $0x20] sm:$0xff] }
  0x75   : > { %1298 = vmatprep.subr.mxu1 %v413_v13  ;;  %1255 = vmatpush3.msra.mxu0 %v397_v12  ;;  %v1962_v41 = vld [vmem:[%s1878_s1 + $0x60] sm:$0xff]  ;;  %v1969_v42 = vld [vmem:[%s1878_s1 + $0x28] sm:$0xff]  ;;  %v1975_v44 = vld [vmem:[%s1878_s1 + $0x30] sm:$0xff] }
  0x76   : > { %1299 = vmatpush3.msra.mxu1 %v413_v13  ;;  %1256 = vmatprep.subr.mxu0 %v396_v14  ;;  %v1972_v43 = vld [vmem:[%s1878_s1 + $0x68] sm:$0xff]  ;;  %v1978_v45 = vld [vmem:[%s1878_s1 + $0x70] sm:$0xff]  ;;  %v1985_v46 = vld [vmem:[%s1878_s1 + $0x38] sm:$0xff] }
  0x77   : > { %1300 = vmatprep.subr.mxu1 %v412_v15  ;;  %1257 = vmatpush3.msra.mxu0 %v396_v14  ;;  %v1988_v47 = vld [vmem:[%s1878_s1 + $0x78] sm:$0xff]  ;;  %v1993_v48 = vld [vmem:[%s1893_s11] ss:$0 sm:$0xff]  ;;  %v1996_v49 = vld [vmem:[%s1893_s11 + $0x1] ss:$0 sm:$0xff] }
  0x78   : > { %1301 = vmatpush3.msra.mxu1 %v412_v15  ;;  %1258 = vmatprep.subr.mxu0 %v395_v16  ;;  %v643_v50 = vmul.f32 %v1993_v48, %v369_v34  ;;  %v651_v51 = vmul.f32 %v1996_v49, %v377_v35  ;;  %v642_v52 = vmul.f32 %v1993_v48, %v1935_v32  ;;  %v2005_v54 = vld [vmem:[%s1886_s7] ss:$0 sm:$0xff]  ;;  %v2008_v56 = vld [vmem:[%s1886_s7 + $0x1] ss:$0 sm:$0xff] }
  0x79   : > { %1302 = vmatprep.subr.mxu1 %v411_v17  ;;  %1259 = vmatpush3.msra.mxu0 %v395_v16  ;;  %v650_v53 = vmul.f32 %v1996_v49, %v1938_v33  ;;  %v645_v62 = vmul.f32 %v1993_v48, %v1953_v38  ;;  %v653_v63 = vmul.f32 %v1996_v49, %v1956_v39 }
  0x7a   : > { %1303 = vmatpush3.msra.mxu1 %v411_v17  ;;  %1260 = vmatprep.subr.mxu0 %v394_v18  ;;  %v644_v6 = vmul.f32 %v1993_v48, %v1944_v36  ;;  %v652_v7 = vmul.f32 %v1996_v49, %v1947_v37 }
  0x7b   : > { %1304 = vmatprep.subr.mxu1 %v410_v19  ;;  %1261 = vmatpush3.msra.mxu0 %v394_v18  ;;  %v647_v18 = vmul.f32 %v1993_v48, %v1969_v42 }
  0x7c   : > { %1305 = vmatpush3.msra.mxu1 %v410_v19  ;;  %1262 = vmatprep.subr.mxu0 %v393_v20 }
  0x7d   : > { %1306 = vmatprep.subr.mxu1 %v409_v21  ;;  %1263 = vmatpush3.msra.mxu0 %v393_v20 }
  0x7e   : > { %1307 = vmatpush3.msra.mxu1 %v409_v21  ;;  %1264 = vmatprep.subr.mxu0 %v392_v22 }
  0x7f   : > { %1308 = vmatprep.subr.mxu1 %v408_v23  ;;  %1265 = vmatpush3.msra.mxu0 %v392_v22 }
  0x80   : > { %1309 = vmatpush3.msra.mxu1 %v408_v23  ;;  %1266 = vmatprep.subr.mxu0 %v391_v24 }
  0x81   : > { %1310 = vmatprep.subr.mxu1 %v407_v25  ;;  %1267 = vmatpush3.msra.mxu0 %v391_v24 }
  0x82   : > { %1311 = vmatpush3.msra.mxu1 %v407_v25  ;;  %1268 = vmatprep.subr.mxu0 %v390_v26 }
  0x83   : > { %1312 = vmatprep.subr.mxu1 %v406_v27  ;;  %1269 = vmatpush3.msra.mxu0 %v390_v26 }
  0x84   : > { %1313 = vmatpush3.msra.mxu1 %v406_v27  ;;  %1270 = vmatprep.subr.mxu0 %v389_v28 }
  0x85   : > { %1314 = vmatprep.subr.mxu1 %v405_v29  ;;  %1271 = vmatpush3.msra.mxu0 %v389_v28 }
  0x86   : > { %1315 = vmatpush3.msra.mxu1 %v405_v29  ;;  %1272 = vmatprep.subr.mxu0 %v388_v30 }
  0x87   : > { %1316 = vmatprep.subr.mxu1 %v404_v31  ;;  %1273 = vmatpush3.msra.mxu0 %v388_v30  ;;  %v655_v30 = vmul.f32 %v1996_v49, %v1972_v43 }
  0x88   : > { %1274 = vmatprep.mubr.f32.mxu0 %v1935_v32  ;;  %1317 = vmatpush3.msra.mxu1 %v404_v31  ;;  %v646_v31 = vmul.f32 %v1993_v48, %v1959_v40 }
  0x89   : > { %1318 = vmatprep.mubr.f32.mxu1 %v1938_v33  ;;  %1275 = vmatmul.mubr.f32.vlgmr.msra.gmra.mxu0 %v369_v34 }
  0x8a   : > { %1319 = vmatmul.mubr.f32.vlgmr.msra.gmra.mxu1 %v377_v35  ;;  %1277 = vmatprep.mubr.f32.mxu0 %v1944_v36 }
  0x8b   : > { %1321 = vmatprep.mubr.f32.mxu1 %v1947_v37 }
  0x8d   : > { %1278 = vmatmul.mubr.f32.gmra.mxu0 %v1953_v38 }
  0x8e   : > { %1322 = vmatmul.mubr.f32.gmra.mxu1 %v1956_v39  ;;  %1280 = vmatprep.mubr.f32.mxu0 %v1959_v40 }
  0x8f   : > { %1324 = vmatprep.mubr.f32.mxu1 %v1962_v41 }
  0x91   : > { %1281 = vmatmul.mubr.f32.gmra.mxu0 %v1969_v42 }
  0x92   : > { %1325 = vmatmul.mubr.f32.gmra.mxu1 %v1972_v43  ;;  %1283 = vmatprep.mubr.f32.mxu0 %v1975_v44 }
  0x93   : > { %1327 = vmatprep.mubr.f32.mxu1 %v1978_v45 }
  0x95   : > { %1284 = vmatmul.mubr.f32.gmra.mxu0 %v1985_v46 }
  0x96   : > { %1328 = vmatmul.mubr.f32.gmra.mxu1 %v1988_v47 }
 0x149   : > { %v1276_v55 = vpop.f32.mrf.mxu0 }
 0x14a   : > { %v1320_v57 = vpop.f32.mrf.mxu1  ;;  %v659_v58 = vsub.f32 %v1276_v55, %v643_v50 }
 0x14b   : > { %v667_v59 = vsub.f32 %v1320_v57, %v651_v51  ;;  %v486_v60 = vpop.f32.mrf.mxu0 }
 0x14c   : > { %v591_v61 = vpop.f32.mrf.mxu1  ;;  %v687_v0 = vadd.f32 %v2005_v54, %v659_v58  ;;  %v658_v2 = vsub.f32 %v486_v60, %v642_v52 }
 0x14d   : > { %v695_v1 = vadd.f32 %v2008_v56, %v667_v59  ;;  %v666_v3 = vsub.f32 %v591_v61, %v650_v53  ;;  %v1279_v4 = vpop.f32.mrf.mxu0 }
 0x14e   : > { %v1323_v5 = vpop.f32.mrf.mxu1  ;;  %v2020_v8 = vmul.f32 %v687_v0, %v369_v34  ;;  %v686_v10 = vadd.f32 %v2005_v54, %v658_v2  ;;  %v661_v12 = vsub.f32 %v1279_v4, %v645_v62 }
 0x14f   : > { %v2022_v9 = vmul.f32 %v695_v1, %v377_v35  ;;  %v694_v11 = vadd.f32 %v2008_v56, %v666_v3  ;;  %v669_v13 = vsub.f32 %v1323_v5, %v653_v63  ;;  %v496_v14 = vpop.f32.mrf.mxu0  ;;  %v654_v5 = vmul.f32 %v1996_v49, %v1962_v41 }
 0x150   : > { %v601_v15 = vpop.f32.mrf.mxu1  ;;  %v735_v16 = vand.u32 2147483647, %v2020_v8  ;;  %v2031_v19 = vmul.f32 %v686_v10, %v1935_v32  ;;  %v689_v21 = vadd.f32 %v2005_v54, %v661_v12  ;;  %v660_v25 = vsub.f32 %v496_v14, %v644_v6 }
 0x151   : > { %v743_v17 = vand.u32 2147483647, %v2022_v9  ;;  %v2034_v20 = vmul.f32 %v694_v11, %v1938_v33  ;;  %v697_v22 = vadd.f32 %v2008_v56, %v669_v13  ;;  %v668_v26 = vsub.f32 %v601_v15, %v652_v7  ;;  %v1282_v27 = vpop.f32.mrf.mxu0 }
 0x152   : > { %v751_v23 = vsub.f32 0.0, %v735_v16  ;;  %v734_v28 = vand.u32 2147483647, %v2031_v19  ;;  %v2045_v34 = vmul.f32 %v689_v21, %v1953_v38  ;;  %v688_v52 = vadd.f32 %v2005_v54, %v660_v25  ;;  %v1326_v57 = vpop.f32.mrf.mxu1 }
 0x153   : > { %v759_v24 = vsub.f32 0.0, %v743_v17  ;;  %v742_v29 = vand.u32 2147483647, %v2034_v20  ;;  %v2048_v35 = vmul.f32 %v697_v22, %v1956_v39  ;;  %v696_v53 = vadd.f32 %v2008_v56, %v668_v26  ;;  %v506_v58 = vpop.f32.mrf.mxu0 }
 0x154   : > { %v768_v32 = vmul.f32 1.442695, %v751_v23  ;;  %v750_v50 = vsub.f32 0.0, %v734_v28  ;;  %v737_v55 = vand.u32 2147483647, %v2045_v34  ;;  %v2055_v39 = vmul.f32 %v688_v52, %v1944_v36  ;;  %v611_v10 = vpop.f32.mrf.mxu1 }
 0x155   : > { %v784_v33 = vmul.f32 1.442695, %v759_v24  ;;  %v758_v51 = vsub.f32 0.0, %v742_v29  ;;  %v745_v38 = vand.u32 2147483647, %v2048_v35  ;;  %v2058_v62 = vmul.f32 %v696_v53, %v1947_v37 }
 0x156   : > { %1414 = vpow2.f32 %v768_v32  ;;  %v766_v59 = vmul.f32 1.442695, %v750_v50  ;;  %v753_v61 = vsub.f32 0.0, %v737_v55  ;;  %v663_v63 = vsub.f32 %v1282_v27, %v647_v18 }
 0x157   : > { %1416 = vpow2.f32 %v784_v33  ;;  %v782_v60 = vmul.f32 1.442695, %v758_v51  ;;  %v761_v0 = vsub.f32 0.0, %v745_v38  ;;  %v671_v1 = vsub.f32 %v1326_v57, %v655_v30 }
 0x158   : > { %1418 = vpow2.f32 %v766_v59  ;;  %v662_v2 = vsub.f32 %v506_v58, %v646_v31  ;;  %v772_v3 = vmul.f32 1.442695, %v753_v61  ;;  %v736_v4 = vand.u32 2147483647, %v2055_v39 }
 0x159   : > { %1420 = vpow2.f32 %v782_v60  ;;  %v788_v6 = vmul.f32 1.442695, %v761_v0  ;;  %v744_v7 = vand.u32 2147483647, %v2058_v62  ;;  %v691_v36 = vadd.f32 %v2005_v54, %v663_v63  ;;  %v2109_v60 = vpop.f32.mrf.mxu1 }
 0x15a   : > { %1422 = vpow2.f32 %v772_v3  ;;  %v752_v37 = vsub.f32 0.0, %v736_v4  ;;  %v699_v11 = vadd.f32 %v2008_v56, %v671_v1  ;;  %v690_v14 = vadd.f32 %v2005_v54, %v662_v2 }
 0x15b   : > { %1424 = vpow2.f32 %v788_v6  ;;  %v760_v12 = vsub.f32 0.0, %v744_v7  ;;  %v2067_v13 = vmul.f32 %v691_v36, %v1969_v42  ;;  %v670_v16 = vsub.f32 %v611_v10, %v654_v5  ;;  %v1285_v42 = vpop.f32.mrf.mxu0 }
 0x15c   : > { %v770_v15 = vmul.f32 1.442695, %v752_v37  ;;  %v2072_v21 = vmul.f32 %v699_v11, %v1972_v43  ;;  %v649_v22 = vmul.f32 %v1993_v48, %v1985_v46  ;;  %v2077_v24 = vmul.f32 %v690_v14, %v1959_v40 }
 0x15d   : > { %v786_v17 = vmul.f32 1.442695, %v760_v12  ;;  %v739_v18 = vand.u32 2147483647, %v2067_v13  ;;  %v2081_v25 = vmul.f32 %v1996_v49, %v1988_v47  ;;  %v698_v26 = vadd.f32 %v2008_v56, %v670_v16  ;;  %v2119_v12 = vpop.f32.mrf.mxu0 }
 0x15e   : > { %1426 = vpow2.f32 %v770_v15  ;;  %v2086_v43 = vmul.f32 %v1993_v48, %v1975_v44  ;;  %v2090_v27 = vmul.f32 %v1996_v49, %v1978_v45  ;;  %v719_v40 = vmin.f32 %v2020_v8, 0.0 }
 0x15f   : > { %1428 = vpow2.f32 %v786_v17  ;;  %v755_v23 = vsub.f32 0.0, %v739_v18  ;;  %v727_v29 = vmin.f32 %v2022_v9, 0.0  ;;  %v747_v31 = vand.u32 2147483647, %v2072_v21 }
 0x160   : > { %v718_v50 = vmin.f32 %v2031_v19, 0.0  ;;  %v726_v48 = vmin.f32 %v2034_v20, 0.0  ;;  %v665_v51 = vsub.f32 %v1285_v42, %v649_v22  ;;  %v721_v49 = vmin.f32 %v2045_v34, 0.0 }
 0x161   : > { %v776_v30 = vmul.f32 1.442695, %v755_v23  ;;  %v738_v53 = vand.u32 2147483647, %v2077_v24  ;;  %v2107_v59 = vmul.f32 %v698_v26, %v1962_v41  ;;  %v763_v0 = vsub.f32 0.0, %v747_v31 }
 0x162   : > { %v693_v4 = vadd.f32 %v2005_v54, %v665_v51  ;;  %v673_v7 = vsub.f32 %v2109_v60, %v2081_v25  ;;  %v2351_v34 = vmin.f32 %v2048_v35, 0.0 }
 0x163   : > { %v2092_v28 = vpop.eup %1414  ;;  %1430 = vpow2.f32 %v776_v30  ;;  %v754_v41 = vsub.f32 0.0, %v738_v53  ;;  %v746_v11 = vand.u32 2147483647, %v2107_v59  ;;  %v792_v17 = vmul.f32 1.442695, %v763_v0 }
 0x164   : > { %v1417_v32 = vpop.eup %1416  ;;  %v807_v33 = vadd.f32 1.0, %v2092_v28  ;;  %v810_v61 = vmul.f32 -0.5, %v2092_v28  ;;  %v813_v6 = vand.u32 2147483647, %v2092_v28 }
 0x165   : > { %v879_v52 = vadd.f32 1.0, %v1417_v32  ;;  %v2102_v55 = vpop.eup %1418  ;;  %v882_v1 = vmul.f32 -0.5, %v1417_v32  ;;  %v885_v10 = vand.u32 2147483647, %v1417_v32  ;;  %v774_v31 = vmul.f32 1.442695, %v754_v41 }
 0x166   : > { %1432 = vlog2.f32 %v807_v33  ;;  %v1421_v38 = vpop.eup %1420  ;;  %v798_v63 = vadd.f32 1.0, %v2102_v55  ;;  %v811_v14 = vadd.f32 1.0, %v810_v61  ;;  %v801_v15 = vmul.f32 -0.5, %v2102_v55 }
 0x167   : > { %1434 = vlog2.f32 %v879_v52  ;;  %v870_v2 = vadd.f32 1.0, %v1421_v38  ;;  %v1423_v5 = vpop.eup %1422  ;;  %v873_v16 = vmul.f32 -0.5, %v1421_v38  ;;  %v883_v18 = vadd.f32 1.0, %v882_v1 }
 0x168   : > { %1436 = vlog2.f32 %v798_v63  ;;  %v1425_v36 = vpop.eup %1424  ;;  %v825_v37 = vadd.f32 1.0, %v1423_v5  ;;  %v828_v22 = vmul.f32 -0.5, %v1423_v5  ;;  %vm2124_vm0 = vcmp.lt.f32.partialorder %v813_v6, 0.0004427343 }
 0x169   : > { %1438 = vlog2.f32 %v870_v2  ;;  %v897_v23 = vadd.f32 1.0, %v1425_v36  ;;  %v804_v30 = vand.u32 2147483647, %v2102_v55  ;;  %v664_v33 = vsub.f32 %v2119_v12, %v2086_v43 }
 0x16a   : > { %1440 = vlog2.f32 %v825_v37  ;;  %vm2133_vm1 = vcmp.lt.f32.partialorder %v885_v10, 0.0004427343  ;;  %v876_v53 = vand.u32 2147483647, %v1421_v38  ;;  %v900_v61 = vmul.f32 -0.5, %v1425_v36 }
 0x16b   : > { %v2122_v42 = vpop.eup %1426  ;;  %1442 = vlog2.f32 %v897_v23  ;;  %v802_v0 = vadd.f32 1.0, %v801_v15  ;;  %v874_v1 = vadd.f32 1.0, %v873_v16  ;;  %v831_v2 = vand.u32 2147483647, %v1423_v5 }
 0x16c   : > { %v2131_v51 = vpop.eup %1428  ;;  %v816_v63 = vadd.f32 1.0, %v2122_v42  ;;  %v812_v41 = vmul.f32 %v2092_v28, %v811_v14  ;;  %v884_v37 = vmul.f32 %v1417_v32, %v883_v18  ;;  %v829_v3 = vadd.f32 1.0, %v828_v22 }
 0x16d   : > { %v888_v6 = vadd.f32 1.0, %v2131_v51  ;;  %vm2140_vm2 = vcmp.lt.f32.partialorder %v804_v30, 0.0004427343  ;;  %v903_v58 = vand.u32 2147483647, %v1425_v36  ;;  %v762_v23 = vsub.f32 0.0, %v746_v11 }
 0x16e   : > { %1444 = vlog2.f32 %v816_v63  ;;  %vm2146_vm3 = vcmp.lt.f32.partialorder %v876_v53, 0.0004427343  ;;  %v901_v16 = vadd.f32 1.0, %v900_v61  ;;  %v2151_v28 = vmul.f32 %v693_v4, %v1985_v46 }
 0x16f   : > { %1446 = vlog2.f32 %v888_v6  ;;  %v803_v14 = vmul.f32 %v2102_v55, %v802_v0  ;;  %v875_v18 = vmul.f32 %v1421_v38, %v874_v1  ;;  %vm2154_vm4 = vcmp.lt.f32.partialorder %v831_v2, 0.0004427343 }
 0x170   : > { %v2144_v57 = vpop.eup %1430  ;;  %1448 = vpow2.f32 %v792_v17  ;;  %v819_v11 = vmul.f32 -0.5, %v2122_v42  ;;  %v830_v63 = vmul.f32 %v1423_v5, %v829_v3  ;;  %v790_v6 = vmul.f32 1.442695, %v762_v23 }
 0x171   : > { %1450 = vpow2.f32 %v774_v31  ;;  %vm2159_vm5 = vcmp.lt.f32.partialorder %v903_v58, 0.0004427343  ;;  %v822_v55 = vand.u32 2147483647, %v2122_v42  ;;  %v891_v38 = vmul.f32 -0.5, %v2131_v51 }
 0x172   : > { %v843_v4 = vadd.f32 1.0, %v2144_v57  ;;  %v902_v1 = vmul.f32 %v1425_v36, %v901_v16  ;;  %1452 = vpow2.f32 %v790_v6  ;;  %v741_v3 = vand.u32 2147483647, %v2151_v28 }
 0x173   : > { %v1433_v32 = vpop.eup %1432  ;;  %v820_v23 = vadd.f32 1.0, %v819_v11  ;;  %v701_v36 = vadd.f32 %v2008_v56, %v673_v7  ;;  %v894_v52 = vand.u32 2147483647, %v2131_v51  ;;  %vm2189_vm6 = vcmp.lt.f32.partialorder %v822_v55, 0.0004427343 }
 0x174   : > { %v1435_v30 = vpop.eup %1434  ;;  %v809_v53 = vmul.f32 0.6931472, %v1433_v32  ;;  %v757_v26 = vsub.f32 0.0, %v741_v3  ;;  %1454 = vlog2.f32 %v843_v4  ;;  %v692_v15 = vadd.f32 %v2005_v54, %v664_v33 }
 0x175   : > { %v881_v17 = vmul.f32 0.6931472, %v1435_v30  ;;  %v1437_v61 = vpop.eup %1436  ;;  %v2194_v10 = vmul.f32 %v701_v36, %v1988_v47  ;;  %vm895_vm7 = vcmp.lt.f32.partialorder %v894_v52, 0.0004427343  ;;  %v846_v3 = vmul.f32 -0.5, %v2144_v57 }
 0x176   : > { %v815_v0 = vsel %vm2124_vm0, %v812_v41, %v809_v53  ;;  %v1439_v5 = vpop.eup %1438  ;;  %v800_v2 = vmul.f32 0.6931472, %v1437_v61  ;;  %v780_v7 = vmul.f32 1.442695, %v757_v26  ;;  %v621_v53 = vpop.f32.mrf.mxu1  ;;  %v2353_v61 = vmin.f32 %v2058_v62, 0.0 }
 0x177   : > { %v943_v58 = vsub.f32 %v719_v40, %v815_v0  ;;  %v887_v31 = vsel %vm2133_vm1, %v884_v37, %v881_v17  ;;  %v872_v30 = vmul.f32 0.6931472, %v1439_v5  ;;  %v1441_v41 = vpop.eup %1440  ;;  %v892_v40 = vadd.f32 1.0, %v891_v38 }
 0x178   : > { %v951_v32 = vsub.f32 %v727_v29, %v887_v31  ;;  %v806_v8 = vsel %vm2140_vm2, %v803_v14, %v800_v2  ;;  %v827_v16 = vmul.f32 0.6931472, %v1441_v41  ;;  %v1443_v11 = vpop.eup %1442  ;;  %1456 = vpow2.f32 %v780_v7 }
 0x179   : > { %v942_v9 = vsub.f32 %v718_v50, %v806_v8  ;;  %v878_v29 = vsel %vm2146_vm3, %v875_v18, %v872_v30  ;;  %v899_v50 = vmul.f32 0.6931472, %v1443_v11  ;;  %v821_v18 = vmul.f32 %v2122_v42, %v820_v23 }
 0x17a   : > { %v967_v37 = vadd.f32 %v951_v32, %v943_v58  ;;  %v950_v25 = vsub.f32 %v726_v48, %v878_v29  ;;  %v833_v19 = vsel %vm2154_vm4, %v830_v63, %v827_v16  ;;  %v893_v54 = vmul.f32 %v2131_v51, %v892_v40 }
 0x17b   : > { %v1445_v14 = vpop.eup %1444  ;;  %v945_v48 = vsub.f32 %v721_v49, %v833_v19  ;;  %v905_v43 = vsel %vm2159_vm5, %v902_v1, %v899_v50  ;;  %v749_v22 = vand.u32 2147483647, %v2194_v10  ;;  %v2217_v17 = vmul.f32 %v692_v15, %v1975_v44 }
 0x17c   : > { %v966_v20 = vadd.f32 %v950_v25, %v942_v9  ;;  %v1447_v47 = vpop.eup %1446  ;;  %983 = vst [vmem:[%s2205_s27 + $0x8] sm:$0xff] %v967_v37  ;;  %v818_v12 = vmul.f32 0.6931472, %v1445_v14  ;;  %v953_v49 = vsub.f32 %v2351_v34, %v905_v43  ;;  %v672_v46 = vsub.f32 %v621_v53, %v2090_v27 }
 0x17d   : > { %v1449_v33 = vpop.eup %1448  ;;  %v890_v42 = vmul.f32 0.6931472, %v1447_v47  ;;  %v2352_v38 = vmin.f32 %v2055_v39, 0.0  ;;  %v765_v5 = vsub.f32 0.0, %v749_v22  ;;  %v740_v31 = vand.u32 2147483647, %v2217_v17 }
 0x17e   : > { %v824_v63 = vsel %vm2189_vm6, %v821_v18, %v818_v12  ;;  %v915_v6 = vadd.f32 1.0, %v1449_v33  ;;  %v1451_v55 = vpop.eup %1450  ;;  %982 = vst [vmem:[%s2205_s27] sm:$0xff] %v966_v20  ;;  %v969_v51 = vadd.f32 %v953_v49, %v945_v48  ;;  %v700_v2 = vadd.f32 %v2008_v56, %v672_v46 }
 0x17f   : > { %v944_v35 = vsub.f32 %v2352_v38, %v824_v63  ;;  %v896_v4 = vsel %vm895_vm7, %v893_v54, %v890_v42  ;;  %v1453_v1 = vpop.eup %1452  ;;  %v834_v44 = vadd.f32 1.0, %v1451_v55  ;;  %v918_v23 = vmul.f32 -0.5, %v1449_v33 }
 0x180   : > { %v952_v0 = vsub.f32 %v2353_v61, %v896_v4  ;;  %1458 = vlog2.f32 %v915_v6  ;;  %v906_v27 = vadd.f32 1.0, %v1453_v1  ;;  %985 = vst [vmem:[%s2205_s27 + $0x18] sm:$0xff] %v969_v51  ;;  %v796_v62 = vmul.f32 1.442695, %v765_v5 }
 0x181   : > { %1460 = vlog2.f32 %v834_v44  ;;  %v1455_v39 = vpop.eup %1454  ;;  %v847_v32 = vadd.f32 1.0, %v846_v3  ;;  %v756_v30 = vsub.f32 0.0, %v740_v31  ;;  %v2231_v26 = vmul.f32 %v700_v2, %v1978_v45 }
 0x182   : > { %v968_v58 = vadd.f32 %v952_v0, %v944_v35  ;;  %1462 = vlog2.f32 %v906_v27  ;;  %v849_v36 = vand.u32 2147483647, %v2144_v57  ;;  %v845_v8 = vmul.f32 0.6931472, %v1455_v39 }
 0x183   : > { %1464 = vpow2.f32 %v796_v62  ;;  %v778_v40 = vmul.f32 1.442695, %v756_v30  ;;  %v748_v56 = vand.u32 2147483647, %v2231_v26  ;;  %v919_v52 = vadd.f32 1.0, %v918_v23 }
 0x184   : > { %984 = vst [vmem:[%s2205_s27 + $0x10] sm:$0xff] %v968_v58  ;;  %v837_v37 = vmul.f32 -0.5, %v1451_v55  ;;  %v848_v9 = vmul.f32 %v2144_v57, %v847_v32  ;;  %v909_v29 = vmul.f32 -0.5, %v1453_v1  ;;  %vm850_vm8 = vcmp.lt.f32.partialorder %v849_v36, 0.0004427343 }
 0x185   : > { %v2234_v41 = vpop.eup %1456  ;;  %1466 = vpow2.f32 %v778_v40  ;;  %v764_v16 = vsub.f32 0.0, %v748_v56  ;;  %v921_v11 = vand.u32 2147483647, %v1449_v33  ;;  %v723_v19 = vmin.f32 %v2067_v13, 0.0 }
 0x186   : > { %v861_v45 = vadd.f32 1.0, %v2234_v41  ;;  %v851_v25 = vsel %vm850_vm8, %v848_v9, %v845_v8  ;;  %v731_v50 = vmin.f32 %v2072_v21, 0.0  ;;  %v920_v15 = vmul.f32 %v1449_v33, %v919_v52 }
 0x187   : > { %v794_v60 = vmul.f32 1.442695, %v764_v16  ;;  %v838_v14 = vadd.f32 1.0, %v837_v37  ;;  %v840_v48 = vand.u32 2147483647, %v1451_v55  ;;  %v910_v18 = vadd.f32 1.0, %v909_v29 }
 0x188   : > { %v947_v57 = vsub.f32 %v723_v19, %v851_v25  ;;  %vm922_vm9 = vcmp.lt.f32.partialorder %v921_v11, 0.0004427343  ;;  %v912_v53 = vand.u32 2147483647, %v1453_v1  ;;  %v722_v13 = vmin.f32 %v2077_v24, 0.0 }
 0x189   : > { %1468 = vpow2.f32 %v794_v60  ;;  %v839_v49 = vmul.f32 %v1451_v55, %v838_v14  ;;  %vm841_vm10 = vcmp.lt.f32.partialorder %v840_v48, 0.0004427343  ;;  %v911_v33 = vmul.f32 %v1453_v1, %v910_v18 }
 0x18a   : > { %1470 = vlog2.f32 %v861_v45  ;;  %v730_v63 = vmin.f32 %v2107_v59, 0.0  ;;  %vm913_vm11 = vcmp.lt.f32.partialorder %v912_v53, 0.0004427343  ;;  %v864_v24 = vmul.f32 -0.5, %v2234_v41 }
 0x18b   : > { %v867_v5 = vand.u32 2147483647, %v2234_v41  ;;  %v725_v32 = vmin.f32 %v2151_v28, 0.0  ;;  %v733_v37 = vmin.f32 %v2194_v10, 0.0  ;;  %v724_v19 = vmin.f32 %v2217_v17, 0.0 }
 0x18c   : > { %v865_v44 = vadd.f32 1.0, %v864_v24  ;;  %v732_v14 = vmin.f32 %v2231_v26, 0.0 }
 0x18d   : > { %v1459_v7 = vpop.eup %1458  ;;  %vm868_vm12 = vcmp.lt.f32.partialorder %v867_v5, 0.0004427343 }
 0x18e   : > { %v917_v20 = vmul.f32 0.6931472, %v1459_v7  ;;  %v1461_v47 = vpop.eup %1460  ;;  %v866_v31 = vmul.f32 %v2234_v41, %v865_v44 }
 0x18f   : > { %v1463_v12 = vpop.eup %1462  ;;  %v836_v34 = vmul.f32 0.6931472, %v1461_v47 }
 0x190   : > { %v923_v43 = vsel %vm922_vm9, %v920_v15, %v917_v20  ;;  %v908_v21 = vmul.f32 0.6931472, %v1463_v12  ;;  %v1465_v6 = vpop.eup %1464 }
 0x191   : > { %v955_v54 = vsub.f32 %v731_v50, %v923_v43  ;;  %v842_v22 = vsel %vm841_vm10, %v839_v49, %v836_v34  ;;  %v933_v35 = vadd.f32 1.0, %v1465_v6  ;;  %v936_v59 = vmul.f32 -0.5, %v1465_v6 }
 0x192   : > { %v946_v46 = vsub.f32 %v722_v13, %v842_v22  ;;  %v914_v51 = vsel %vm913_vm11, %v911_v33, %v908_v21  ;;  %v1467_v4 = vpop.eup %1466  ;;  %v939_v39 = vand.u32 2147483647, %v1465_v6 }
 0x193   : > { %v971_v42 = vadd.f32 %v955_v54, %v947_v57  ;;  %v954_v38 = vsub.f32 %v730_v63, %v914_v51  ;;  %1472 = vlog2.f32 %v933_v35  ;;  %v852_v55 = vadd.f32 1.0, %v1467_v4 }
 0x194   : > { %v855_v27 = vmul.f32 -0.5, %v1467_v4  ;;  %v937_v2 = vadd.f32 1.0, %v936_v59  ;;  %v858_v56 = vand.u32 2147483647, %v1467_v4  ;;  %vm940_vm13 = vcmp.lt.f32.partialorder %v939_v39, 0.0004427343 }
 0x195   : > { %987 = vst [vmem:[%s2205_s27 + $0x28] sm:$0xff] %v971_v42  ;;  %v970_v61 = vadd.f32 %v954_v38, %v946_v46  ;;  %1474 = vlog2.f32 %v852_v55 }
 0x196   : > { %v1469_v0 = vpop.eup %1468  ;;  %v856_v30 = vadd.f32 1.0, %v855_v27  ;;  %v938_v40 = vmul.f32 %v1465_v6, %v937_v2  ;;  %vm859_vm14 = vcmp.lt.f32.partialorder %v858_v56, 0.0004427343 }
 0x197   : > { %986 = vst [vmem:[%s2205_s27 + $0x20] sm:$0xff] %v970_v61  ;;  %v1471_v1 = vpop.eup %1470  ;;  %v924_v3 = vadd.f32 1.0, %v1469_v0  ;;  %v927_v36 = vmul.f32 -0.5, %v1469_v0  ;;  %v930_v28 = vand.u32 2147483647, %v1469_v0 }
 0x198   : > { %v863_v58 = vmul.f32 0.6931472, %v1471_v1  ;;  %v857_v11 = vmul.f32 %v1467_v4, %v856_v30 }
 0x199   : > { %1476 = vlog2.f32 %v924_v3  ;;  %v928_v45 = vadd.f32 1.0, %v927_v36  ;;  %vm931_vm15 = vcmp.lt.f32.partialorder %v930_v28, 0.0004427343 }
 0x19a   : > { %v869_v23 = vsel %vm868_vm12, %v866_v31, %v863_v58 }
 0x19b   : > { %v949_v52 = vsub.f32 %v725_v32, %v869_v23  ;;  %v929_v50 = vmul.f32 %v1469_v0, %v928_v45 }
 0x1a0   : > { %v1473_v62 = vpop.eup %1472 }
 0x1a1   : > { %v935_v8 = vmul.f32 0.6931472, %v1473_v62 }
 0x1a2   : > { %v1475_v9 = vpop.eup %1474 }
 0x1a3   : > { %v941_v29 = vsel %vm940_vm13, %v938_v40, %v935_v8  ;;  %v854_v16 = vmul.f32 0.6931472, %v1475_v9 }
 0x1a4   : > { %v957_v41 = vsub.f32 %v733_v37, %v941_v29 }
 0x1a5   : > { %v860_v60 = vsel %vm859_vm14, %v857_v11, %v854_v16 }
 0x1a6   : > { %v973_v25 = vadd.f32 %v957_v41, %v949_v52  ;;  %v1477_v7 = vpop.eup %1476  ;;  %v948_v15 = vsub.f32 %v724_v19, %v860_v60 }
 0x1a7   : > { %v926_v10 = vmul.f32 0.6931472, %v1477_v7 }
 0x1a8   : > { %989 = vst [vmem:[%s2205_s27 + $0x38] sm:$0xff] %v973_v25 }
 0x1a9   : > { %v932_v20 = vsel %vm931_vm15, %v929_v50, %v926_v10 }
 0x1aa   : > { %v956_v48 = vsub.f32 %v732_v14, %v932_v20 }
 0x1ac   : > { %v972_v18 = vadd.f32 %v956_v48, %v948_v15 }
 0x1ae   : > { %988 = vst [vmem:[%s2205_s27 + $0x30] sm:$0xff] %v972_v18 }
 0x1af   : > { %1603 = shalt.err (!%p1600_p7)
}
 0x1b0   : > { %s1604_s1 = scalar_lea.hbm %s2258_s22, 1024  ;;  %s1608_s9 = scalar_lea.hbm %s2313_s4, 2048 }
 0x1b1   : > { %p1605_p6 = scmp.ne.s32.totalorder %s2258_s22, %s1604_s1  ;;  %p1609_p2 = scmp.lt.s32.totalorder %s2258_s22, %s2313_s4 }
 0x1b2   : > { %p1610_p8 = scmp.lt.s32.totalorder %s1608_s9, %s1604_s1 }
 0x1b3   : > { %p1606_p10 = pnand %p1605_p6, %p1771_p9 }
 0x1b4   : > { %p1611_p0 = por %p1610_p8, %p1609_p2 }
 0x1b5   : > { %p1607_p13 = pneg %p1606_p10 }
 0x1b7   : > { %p1612_p1 = pnand %p1611_p0, %p1607_p13 }
 0x1b9   : > { %1615 = shalt.err (!%p1612_p1)
}
 0x1ba   : > { %s1689_s11 = smov 128   ;;  %s1690_s23 = smov 8  }
 0x1bb   : > { %1338 = dma.vmem_to_hbm [thread:$0]  (%p1771_p9), %s2260_s2, 1024, %s2258_s22, %s991_s13, %s1689_s11, %s1689_s11, %s1690_s23  }
 0x1bc PF: > { %s1019_s24 = sand.u32 1, %s1658_s15   ;;  %p1354_p3 = pnand %p1157_p12, %p1778_p11 }
 0x1bd   : > { %s1020_s21 = scalar_lea.sflag [#allocation4], %s1019_s24 }
 0x1be   : > { %p1355_p4 = pneg %p1354_p3 }
 0x1c0   : > { %1653 = dma.done.wait (%p1355_p4), %s1020_s21, 1024  }
 0x1c1   : > { %1655 = vsyncadd (%p1355_p4), %s1020_s21, 4294966272  ;;  %s26_s20 = sadd.s32 1, %s1678_s20   ;;  %s2354_s28 = sld [smem:[#allocation16_spill]] }
 0x1c2   : > { %p23_p5 = scmp.ge.s32.totalorder %s26_s20, 4   ;;  %s2355_s5 = sld [smem:[#allocation15_spill]] }
 0x1c3   : > { %s2356_s15 = smov %s1662_s16  ;;  %s2357_s16 = smov %s1666_s17 }
 0x1c4   : > { %s2359_s18 = smov %s1674_s19  ;;  %25 = sbr.rel (!%p23_p5) target bundleno = 14 (0xe), region = 122 }
 0x1c7   : > { %s2358_s17 = smov %s2354_s28 }
 0x1c8   : > { %s2360_s19 = smov %s2355_s5 }
 0x1c9   :  { %1025 = vsyncpa [#allocation3], 1 }
 0x1ca   :  { %1027 = vsyncpa [#allocation3 + $0x1], 1 }
 0x1cb   :  { %1028 = vsyncpa [#allocation6], 1 }
 0x1cc   :  { %1030 = vsyncpa [#allocation6 + $0x1], 1 }
 0x1cd   :  { %1031 = vsyncpa [#allocation9], 1 }
 0x1ce   :  { %1033 = vsyncpa [#allocation9 + $0x1], 1 }
 0x1cf   :  { %1034 = vsyncpa [#allocation4], 1 }
 0x1d0   :  { %1036 = vsyncpa [#allocation4 + $0x1], 1 }

</bundles_post_ra>
